<compile_context>
chip_gen: v6e
topology: v6e:2x2x1
jax: 0.10.0
libtpu: 0.0.40
codegen_flags: <defaults>
</compile_context>

<pallas_src>
import functools

import jax
import jax.numpy as jnp
import numpy as np
from jax.experimental import pallas as pl
from jax.experimental.pallas import tpu as pltpu

BN_EPS = 1e-5
LANE = 128


def _round_up(n, m):
    return ((n + m - 1) // m) * m


def _make_fused_mlp_kernel(num_layers):
    """Fused kernel: x, then per hidden layer (W, gamma, beta), then (W, b), out."""

    def kernel(*refs):
        x_ref = refs[0]
        o_ref = refs[-1]
        prm = refs[1:-1]

        h = x_ref[...]  # (M, Din_pad) f32, VMEM-resident across all layers
        idx = 0
        for _ in range(num_layers - 1):
            w_ref, g_ref, beta_ref = prm[idx], prm[idx + 1], prm[idx + 2]
            idx += 3
            # bf16 MXU matmul, f32 accumulate. Pre-BN bias omitted (cancelled
            # exactly by the mean subtraction below).
            y = jnp.dot(h.astype(jnp.bfloat16), w_ref[...],
                        preferred_element_type=jnp.float32)
            # Single-pass BatchNorm1d (training) stats over the batch rows.
            mean = jnp.mean(y, axis=0, keepdims=True)
            msq = jnp.mean(y * y, axis=0, keepdims=True)
            var = jnp.maximum(msq - mean * mean, 0.0)  # biased variance
            y = (y - mean) * jax.lax.rsqrt(var + BN_EPS)
            h = jnp.maximum(y * g_ref[...] + beta_ref[...], 0.0)  # ReLU

        # Final layer: Linear only (bias kept).
        w_ref, b_ref = prm[idx], prm[idx + 1]
        y = jnp.dot(h.astype(jnp.bfloat16), w_ref[...],
                    preferred_element_type=jnp.float32)
        o_ref[...] = y + b_ref[...]

    return kernel


def init_mlp_params(key, input_dim, hidden_dim, output_dim, num_layers):
    """Deterministic synthetic init matching the PyTorch module's parameter shapes."""
    h = [hidden_dim] * (num_layers - 1)
    dims_in = [input_dim] + h
    dims_out = h + [output_dim]
    params = []
    for din, dout in zip(dims_in, dims_out):
        key, kw, kb = jax.random.split(key, 3)
        bound = 1.0 / np.sqrt(din)
        w = jax.random.uniform(kw, (din, dout), jnp.float32, -bound, bound)
        b = jax.random.uniform(kb, (1, dout), jnp.float32, -bound, bound)
        gamma = jnp.ones((1, dout), jnp.float32)
        beta = jnp.zeros((1, dout), jnp.float32)
        params.append((w, b, gamma, beta))
    return params


@functools.partial(jax.jit, static_argnames=("num_layers",))
def mlp_forward(x, params, num_layers):
    B, N, D = x.shape
    out_dim = params[-1][0].shape[1]
    M = B * N
    h2d = x.reshape(M, D)

    # --- pad feature dims to lane-dense multiples of 128, cast W to bf16 ---
    d_in_pad = _round_up(D, LANE)
    kernel_args = [jnp.pad(h2d, ((0, 0), (0, d_in_pad - D)))]
    prev_pad = d_in_pad
    for i, (w, b, gamma, beta) in enumerate(params):
        din, dout = w.shape
        dout_pad = _round_up(dout, LANE)
        w_pad = jnp.pad(w, ((0, prev_pad - din), (0, dout_pad - dout)))
        w_pad = w_pad.astype(jnp.bfloat16)
        if i < num_layers - 1:
            g_pad = jnp.pad(gamma, ((0, 0), (0, dout_pad - dout)))
            bt_pad = jnp.pad(beta, ((0, 0), (0, dout_pad - dout)))
            kernel_args += [w_pad, g_pad, bt_pad]
        else:
            b_pad = jnp.pad(b, ((0, 0), (0, dout_pad - dout)))
            kernel_args += [w_pad, b_pad]
        prev_pad = dout_pad
    out_pad_dim = prev_pad

    out = pl.pallas_call(
        _make_fused_mlp_kernel(num_layers),
        out_shape=jax.ShapeDtypeStruct((M, out_pad_dim), jnp.float32),
        in_specs=[pl.BlockSpec(memory_space=pltpu.MemorySpace.VMEM)] * len(kernel_args),
        out_specs=pl.BlockSpec(memory_space=pltpu.MemorySpace.VMEM),
        compiler_params=pltpu.CompilerParams(vmem_limit_bytes=32 * 1024 * 1024),
    )(*kernel_args)

    return out[:, :out_dim].reshape(B, N, out_dim)


def mlp_forward_ref(x, params, num_layers):
    """Pure-JAX f32 reference reproducing the PyTorch forward (training-mode BN)."""
    B, N, D = x.shape
    out_dim = params[-1][0].shape[1]
    h = x.reshape(B * N, D)
    for i, (w, b, gamma, beta) in enumerate(params):
        y = h @ w + b
        if i < num_layers - 1:
            mean = jnp.mean(y, axis=0, keepdims=True)
            var = jnp.mean((y - mean) ** 2, axis=0, keepdims=True)
            y = (y - mean) / jnp.sqrt(var + BN_EPS) * gamma + beta
            y = jnp.maximum(y, 0.0)
        h = y
    return h.reshape(B, N, out_dim)


def mlp_forward_ref_matched(x, params, num_layers):
    """Pure-JAX reference with the SAME numerics as the kernel (bf16 matmul inputs,
    f32 accumulation, bias-free pre-BN path, single-pass variance)."""
    B, N, D = x.shape
    out_dim = params[-1][0].shape[1]
    h = x.reshape(B * N, D)
    for i, (w, b, gamma, beta) in enumerate(params):
        y = jnp.dot(h.astype(jnp.bfloat16), w.astype(jnp.bfloat16),
                    preferred_element_type=jnp.float32)
        if i < num_layers - 1:
            mean = jnp.mean(y, axis=0, keepdims=True)
            msq = jnp.mean(y * y, axis=0, keepdims=True)
            var = jnp.maximum(msq - mean * mean, 0.0)
            y = (y - mean) * jax.lax.rsqrt(var + BN_EPS)
            h = jnp.maximum(y * gamma + beta, 0.0)
        else:
            h = y + b
    return h.reshape(B, N, out_dim)


if __name__ == "__main__":
    B, N = 2, 8
    input_dim, hidden_dim, output_dim, num_layers = 16, 32, 16, 3

    key = jax.random.PRNGKey(0)
    kx, kp = jax.random.split(key)
    x = jax.random.normal(kx, (B, N, input_dim), jnp.float32)
    params = init_mlp_params(kp, input_dim, hidden_dim, output_dim, num_layers)

    out = jax.block_until_ready(mlp_forward(x, params, num_layers))
    assert out.shape == (B, N, output_dim)

    # Tight check against the numerics-matched reference (validates kernel logic).
    ref_matched = mlp_forward_ref_matched(x, params, num_layers)
    np.testing.assert_allclose(np.asarray(out), np.asarray(ref_matched),
                               rtol=1e-3, atol=1e-3)

    # Looser check against the exact f32 PyTorch-equivalent reference
    # (difference is only the bf16 MXU inputs).
    ref_exact = mlp_forward_ref(x, params, num_layers)
    np.testing.assert_allclose(np.asarray(out), np.asarray(ref_exact),
                               rtol=5e-2, atol=5e-2)

    print("KERNEL_OK")
</pallas_src>

<mosaic_0001>
module attributes {stable_mosaic.version = 11 : i64} {
  func.func @kernel(%arg0: memref<16x128xf32, #tpu.memory_space<vmem>>, %arg1: memref<128x128xbf16, #tpu.memory_space<vmem>>, %arg2: memref<1x128xf32, #tpu.memory_space<vmem>>, %arg3: memref<1x128xf32, #tpu.memory_space<vmem>>, %arg4: memref<128x128xbf16, #tpu.memory_space<vmem>>, %arg5: memref<1x128xf32, #tpu.memory_space<vmem>>, %arg6: memref<1x128xf32, #tpu.memory_space<vmem>>, %arg7: memref<128x128xbf16, #tpu.memory_space<vmem>>, %arg8: memref<1x128xf32, #tpu.memory_space<vmem>>, %arg9: memref<16x128xf32, #tpu.memory_space<vmem>>) attributes {dimension_semantics = [], scalar_prefetch = 0 : i64, scratch_operands = 0 : i64, tpu.core_type = #tpu.core_type<tc>} {
    %c0 = arith.constant 0 : index
    %c0_0 = arith.constant 0 : index
    %0 = vector.load %arg0[%c0, %c0_0] : memref<16x128xf32, #tpu.memory_space<vmem>>, vector<16x128xf32>
    %1 = arith.truncf %0 : vector<16x128xf32> to vector<16x128xbf16>
    %c0_1 = arith.constant 0 : index
    %c0_2 = arith.constant 0 : index
    %2 = vector.load %arg1[%c0_1, %c0_2] : memref<128x128xbf16, #tpu.memory_space<vmem>>, vector<128x128xbf16>
    %cst = arith.constant dense<0.000000e+00> : vector<16x128xf32>
    %3 = tpu.matmul %1, %2, %cst {dimension_numbers = #tpu.dot_dimension_numbers<[1], [0], [0], [1], [0, 0, 1, 1], [], []>} : vector<16x128xbf16>, vector<128x128xbf16>, vector<16x128xf32> -> vector<16x128xf32>
    %cst_3 = arith.constant dense<0.000000e+00> : vector<128xf32>
    %4 = vector.multi_reduction <add>, %3, %cst_3 [0] : vector<16x128xf32> to vector<128xf32>
    %5 = vector.shape_cast %4 : vector<128xf32> to vector<1x128xf32>
    %cst_4 = arith.constant 1.600000e+01 : f32
    %6 = vector.broadcast %cst_4 : f32 to vector<1x128xf32>
    %7 = arith.divf %5, %6 : vector<1x128xf32>
    %8 = arith.mulf %3, %3 : vector<16x128xf32>
    %cst_5 = arith.constant dense<0.000000e+00> : vector<128xf32>
    %9 = vector.multi_reduction <add>, %8, %cst_5 [0] : vector<16x128xf32> to vector<128xf32>
    %10 = vector.shape_cast %9 : vector<128xf32> to vector<1x128xf32>
    %cst_6 = arith.constant 1.600000e+01 : f32
    %11 = vector.broadcast %cst_6 : f32 to vector<1x128xf32>
    %12 = arith.divf %10, %11 : vector<1x128xf32>
    %13 = arith.mulf %7, %7 : vector<1x128xf32>
    %14 = arith.subf %12, %13 : vector<1x128xf32>
    %cst_7 = arith.constant 0.000000e+00 : f32
    %15 = vector.broadcast %cst_7 : f32 to vector<1x128xf32>
    %16 = arith.maximumf %14, %15 : vector<1x128xf32>
    %17 = vector.broadcast %7 : vector<1x128xf32> to vector<16x128xf32>
    %18 = arith.subf %3, %17 : vector<16x128xf32>
    %cst_8 = arith.constant 9.99999974E-6 : f32
    %19 = vector.broadcast %cst_8 : f32 to vector<1x128xf32>
    %20 = arith.addf %16, %19 : vector<1x128xf32>
    %21 = math.rsqrt %20 : vector<1x128xf32>
    %22 = vector.broadcast %21 : vector<1x128xf32> to vector<16x128xf32>
    %23 = arith.mulf %18, %22 : vector<16x128xf32>
    %c0_9 = arith.constant 0 : index
    %c0_10 = arith.constant 0 : index
    %24 = vector.load %arg2[%c0_9, %c0_10] : memref<1x128xf32, #tpu.memory_space<vmem>>, vector<1x128xf32>
    %25 = vector.broadcast %24 : vector<1x128xf32> to vector<16x128xf32>
    %26 = arith.mulf %23, %25 : vector<16x128xf32>
    %c0_11 = arith.constant 0 : index
    %c0_12 = arith.constant 0 : index
    %27 = vector.load %arg3[%c0_11, %c0_12] : memref<1x128xf32, #tpu.memory_space<vmem>>, vector<1x128xf32>
    %28 = vector.broadcast %27 : vector<1x128xf32> to vector<16x128xf32>
    %29 = arith.addf %26, %28 : vector<16x128xf32>
    %cst_13 = arith.constant 0.000000e+00 : f32
    %30 = vector.broadcast %cst_13 : f32 to vector<16x128xf32>
    %31 = arith.maximumf %29, %30 : vector<16x128xf32>
    %32 = arith.truncf %31 : vector<16x128xf32> to vector<16x128xbf16>
    %c0_14 = arith.constant 0 : index
    %c0_15 = arith.constant 0 : index
    %33 = vector.load %arg4[%c0_14, %c0_15] : memref<128x128xbf16, #tpu.memory_space<vmem>>, vector<128x128xbf16>
    %cst_16 = arith.constant dense<0.000000e+00> : vector<16x128xf32>
    %34 = tpu.matmul %32, %33, %cst_16 {dimension_numbers = #tpu.dot_dimension_numbers<[1], [0], [0], [1], [0, 0, 1, 1], [], []>} : vector<16x128xbf16>, vector<128x128xbf16>, vector<16x128xf32> -> vector<16x128xf32>
    %cst_17 = arith.constant dense<0.000000e+00> : vector<128xf32>
    %35 = vector.multi_reduction <add>, %34, %cst_17 [0] : vector<16x128xf32> to vector<128xf32>
    %36 = vector.shape_cast %35 : vector<128xf32> to vector<1x128xf32>
    %cst_18 = arith.constant 1.600000e+01 : f32
    %37 = vector.broadcast %cst_18 : f32 to vector<1x128xf32>
    %38 = arith.divf %36, %37 : vector<1x128xf32>
    %39 = arith.mulf %34, %34 : vector<16x128xf32>
    %cst_19 = arith.constant dense<0.000000e+00> : vector<128xf32>
    %40 = vector.multi_reduction <add>, %39, %cst_19 [0] : vector<16x128xf32> to vector<128xf32>
    %41 = vector.shape_cast %40 : vector<128xf32> to vector<1x128xf32>
    %cst_20 = arith.constant 1.600000e+01 : f32
    %42 = vector.broadcast %cst_20 : f32 to vector<1x128xf32>
    %43 = arith.divf %41, %42 : vector<1x128xf32>
    %44 = arith.mulf %38, %38 : vector<1x128xf32>
    %45 = arith.subf %43, %44 : vector<1x128xf32>
    %cst_21 = arith.constant 0.000000e+00 : f32
    %46 = vector.broadcast %cst_21 : f32 to vector<1x128xf32>
    %47 = arith.maximumf %45, %46 : vector<1x128xf32>
    %48 = vector.broadcast %38 : vector<1x128xf32> to vector<16x128xf32>
    %49 = arith.subf %34, %48 : vector<16x128xf32>
    %cst_22 = arith.constant 9.99999974E-6 : f32
    %50 = vector.broadcast %cst_22 : f32 to vector<1x128xf32>
    %51 = arith.addf %47, %50 : vector<1x128xf32>
    %52 = math.rsqrt %51 : vector<1x128xf32>
    %53 = vector.broadcast %52 : vector<1x128xf32> to vector<16x128xf32>
    %54 = arith.mulf %49, %53 : vector<16x128xf32>
    %c0_23 = arith.constant 0 : index
    %c0_24 = arith.constant 0 : index
    %55 = vector.load %arg5[%c0_23, %c0_24] : memref<1x128xf32, #tpu.memory_space<vmem>>, vector<1x128xf32>
    %56 = vector.broadcast %55 : vector<1x128xf32> to vector<16x128xf32>
    %57 = arith.mulf %54, %56 : vector<16x128xf32>
    %c0_25 = arith.constant 0 : index
    %c0_26 = arith.constant 0 : index
    %58 = vector.load %arg6[%c0_25, %c0_26] : memref<1x128xf32, #tpu.memory_space<vmem>>, vector<1x128xf32>
    %59 = vector.broadcast %58 : vector<1x128xf32> to vector<16x128xf32>
    %60 = arith.addf %57, %59 : vector<16x128xf32>
    %cst_27 = arith.constant 0.000000e+00 : f32
    %61 = vector.broadcast %cst_27 : f32 to vector<16x128xf32>
    %62 = arith.maximumf %60, %61 : vector<16x128xf32>
    %63 = arith.truncf %62 : vector<16x128xf32> to vector<16x128xbf16>
    %c0_28 = arith.constant 0 : index
    %c0_29 = arith.constant 0 : index
    %64 = vector.load %arg7[%c0_28, %c0_29] : memref<128x128xbf16, #tpu.memory_space<vmem>>, vector<128x128xbf16>
    %cst_30 = arith.constant dense<0.000000e+00> : vector<16x128xf32>
    %65 = tpu.matmul %63, %64, %cst_30 {dimension_numbers = #tpu.dot_dimension_numbers<[1], [0], [0], [1], [0, 0, 1, 1], [], []>} : vector<16x128xbf16>, vector<128x128xbf16>, vector<16x128xf32> -> vector<16x128xf32>
    %c0_31 = arith.constant 0 : index
    %c0_32 = arith.constant 0 : index
    %66 = vector.load %arg8[%c0_31, %c0_32] : memref<1x128xf32, #tpu.memory_space<vmem>>, vector<1x128xf32>
    %67 = vector.broadcast %66 : vector<1x128xf32> to vector<16x128xf32>
    %68 = arith.addf %65, %67 : vector<16x128xf32>
    %c0_33 = arith.constant 0 : index
    %c0_34 = arith.constant 0 : index
    %69 = vector.load %arg9[%c0_33, %c0_34] : memref<16x128xf32, #tpu.memory_space<vmem>>, vector<16x128xf32>
    tpu.vector_store %arg9[%c0_33, %c0_34], %68 {strides = array<i32>} : memref<16x128xf32, #tpu.memory_space<vmem>>, vector<16x128xf32>,
    return
  }
}

</mosaic_0001>

<bundles_post_ra>
// kernel: mlp_forward.1
= control target key start
LH: loop header
LB: loop body
LE: loop exit
PB: predicated region body
PF: predicated region fallthrough
CT: control target
= control target key end

     0   :  { %v607_v0 = vmov 0.0   ;;  %vm608_vm0 = vmmov 0   ;;  %s788_s1 = inlined_call_operand.vmem [shape: bf16[128,128], index: 1, kind: input, shape index: {}]   ;;  %s789_s0 = inlined_call_operand.vmem [shape: f32[16,128], index: 0, kind: input, shape index: {}]   ;;  %s790_s4 = inlined_call_operand.vmem [shape: bf16[128,128], index: 4, kind: input, shape index: {}]   ;;  %s791_s2 = inlined_call_operand.vmem [shape: f32[1,128], index: 2, kind: input, shape index: {}]   ;;  %s792_s3 = inlined_call_operand.vmem [shape: f32[1,128], index: 3, kind: input, shape index: {}]   ;;  %s793_s7 = inlined_call_operand.vmem [shape: bf16[128,128], index: 7, kind: input, shape index: {}]   ;;  %s794_s5 = inlined_call_operand.vmem [shape: f32[1,128], index: 5, kind: input, shape index: {}]   ;;  %s795_s6 = inlined_call_operand.vmem [shape: f32[1,128], index: 6, kind: input, shape index: {}]   ;;  %s796_s8 = inlined_call_operand.vmem [shape: f32[1,128], index: 8, kind: input, shape index: {}]   ;;  %s797_s9 = inlined_call_operand.vmem [shape: f32[16,128], index: 9, kind: output, shape index: {}]  }
   0x1   :  { %517 = vmatprep.subr.bf16.mxu0 %v607_v0  ;;  %v579_v1 = vld [vmem:[%s788_s1 + $0x38] sm:$0xff]   ;;  %533 = vmatprep.mubr.msk.bf16.mxu0 %vm608_vm0, %v607_v0  ;;  %v580_v2 = vld [vmem:[%s788_s1 + $0x30] sm:$0xff]   ;;  %v581_v3 = vld [vmem:[%s788_s1 + $0x28] sm:$0xff]  }
   0x2   :  { %537 = vmatprep.subr.bf16.mxu1 %v607_v0  ;;  %553 = vmatprep.mubr.msk.bf16.mxu1 %vm608_vm0, %v607_v0  ;;  %v582_v4 = vld [vmem:[%s788_s1 + $0x20] sm:$0xff]   ;;  %v583_v5 = vld [vmem:[%s788_s1 + $0x18] sm:$0xff]   ;;  %v584_v6 = vld [vmem:[%s788_s1 + $0x10] sm:$0xff]  }
   0x3   :  { %518 = vmatpush3.bf16.msra.mxu0 %v579_v1  ;;  %v585_v7 = vld [vmem:[%s788_s1 + $0x8] sm:$0xff]   ;;  %v586_v8 = vld [vmem:[%s788_s1] sm:$0xff]   ;;  %v587_v12 = vld [vmem:[%s790_s4 + $0x38] sm:$0xff]  }
   0x4   :  { %519 = vmatprep.subr.bf16.mxu0 %v607_v0  ;;  %v33_v9 = vld [vmem:[%s789_s0] sm:$0xff]  ;;  %v34_v10 = vld [vmem:[%s789_s0 + $0x8] sm:$0xff]  ;;  %538 = vmatpush3.bf16.msra.mxu1 %v587_v12  ;;  %v588_v13 = vld [vmem:[%s790_s4 + $0x30] sm:$0xff]  }
   0x5   :  { %v35_v11 = vpack.c.bf16 %v34_v10, %v33_v9  ;;  %539 = vmatprep.subr.bf16.mxu1 %v607_v0  ;;  %v589_v14 = vld [vmem:[%s790_s4 + $0x28] sm:$0xff]   ;;  %v590_v15 = vld [vmem:[%s790_s4 + $0x20] sm:$0xff]   ;;  %v591_v16 = vld [vmem:[%s790_s4 + $0x18] sm:$0xff]  }
   0x6   :  { %v592_v17 = vld [vmem:[%s790_s4 + $0x10] sm:$0xff]   ;;  %v593_v18 = vld [vmem:[%s790_s4 + $0x8] sm:$0xff]   ;;  %v594_v19 = vld [vmem:[%s790_s4] sm:$0xff]  }
   0x7   :  { %520 = vmatpush3.bf16.msra.mxu0 %v580_v2  ;;  %v469_v49 = vld [vmem:[%s791_s2] ss:$0 sm:$0xff]  ;;  %v595_v60 = vld [vmem:[%s793_s7 + $0x38] sm:$0xff]   ;;  %v596_v61 = vld [vmem:[%s793_s7 + $0x30] sm:$0xff]  }
   0x8   :  { %521 = vmatprep.subr.bf16.mxu0 %v607_v0  ;;  %540 = vmatpush3.bf16.msra.mxu1 %v588_v13  ;;  %v470_v52 = vld [vmem:[%s792_s3] ss:$0 sm:$0xff]  ;;  %v597_v62 = vld [vmem:[%s793_s7 + $0x28] sm:$0xff]   ;;  %v599_v1 = vld [vmem:[%s793_s7 + $0x18] sm:$0xff]  }
   0x9   :  { %541 = vmatprep.subr.bf16.mxu1 %v607_v0  ;;  %v598_v63 = vld [vmem:[%s793_s7 + $0x20] sm:$0xff]   ;;  %v600_v2 = vld [vmem:[%s793_s7 + $0x10] sm:$0xff]  }
   0xb   :  { %522 = vmatpush3.bf16.msra.mxu0 %v581_v3  ;;  %v601_v3 = vld [vmem:[%s793_s7 + $0x8] sm:$0xff]  }
   0xc   :  { %523 = vmatprep.subr.bf16.mxu0 %v607_v0  ;;  %542 = vmatpush3.bf16.msra.mxu1 %v589_v14 }
   0xd   :  { %543 = vmatprep.subr.bf16.mxu1 %v607_v0 }
   0xf   :  { %524 = vmatpush3.bf16.msra.mxu0 %v582_v4  ;;  %v602_v4 = vld [vmem:[%s793_s7] sm:$0xff]  }
  0x10   :  { %525 = vmatprep.subr.bf16.mxu0 %v607_v0  ;;  %544 = vmatpush3.bf16.msra.mxu1 %v590_v15 }
  0x11   :  { %545 = vmatprep.subr.bf16.mxu1 %v607_v0 }
  0x13   :  { %526 = vmatpush3.bf16.msra.mxu0 %v583_v5 }
  0x14   :  { %527 = vmatprep.subr.bf16.mxu0 %v607_v0  ;;  %546 = vmatpush3.bf16.msra.mxu1 %v591_v16 }
  0x15   :  { %547 = vmatprep.subr.bf16.mxu1 %v607_v0 }
  0x17   :  { %528 = vmatpush3.bf16.msra.mxu0 %v584_v6 }
  0x18   :  { %529 = vmatprep.subr.bf16.mxu0 %v607_v0  ;;  %548 = vmatpush3.bf16.msra.mxu1 %v592_v17 }
  0x19   :  { %549 = vmatprep.subr.bf16.mxu1 %v607_v0 }
  0x1b   :  { %530 = vmatpush3.bf16.msra.mxu0 %v585_v7 }
  0x1c   :  { %531 = vmatprep.subr.bf16.mxu0 %v607_v0  ;;  %550 = vmatpush3.bf16.msra.mxu1 %v593_v18 }
  0x1d   :  { %551 = vmatprep.subr.bf16.mxu1 %v607_v0 }
  0x1f   :  { %532 = vmatpush3.bf16.msra.mxu0 %v586_v8 }
  0x20   :  { %557 = vmatprep.subr.bf16.mxu0 %v607_v0  ;;  %552 = vmatpush3.bf16.msra.mxu1 %v594_v19 }
  0x22   :  { %534 = vmatmul.mubr.bf16.vlgmr.msra.gmra.mxu0 %v35_v11 }
  0x23   :  { %573 = vmatprep.mubr.msk.bf16.mxu0 %vm608_vm0, %v607_v0  ;;  %558 = vmatpush3.bf16.msra.mxu0 %v595_v60 }
  0x24   :  { %559 = vmatprep.subr.bf16.mxu0 %v607_v0 }
  0x27   :  { %560 = vmatpush3.bf16.msra.mxu0 %v596_v61 }
  0x28   :  { %561 = vmatprep.subr.bf16.mxu0 %v607_v0 }
  0x2b   :  { %562 = vmatpush3.bf16.msra.mxu0 %v597_v62 }
  0x2c   :  { %563 = vmatprep.subr.bf16.mxu0 %v607_v0 }
  0x2f   :  { %564 = vmatpush3.bf16.msra.mxu0 %v598_v63 }
  0x30   :  { %565 = vmatprep.subr.bf16.mxu0 %v607_v0 }
  0x33   :  { %566 = vmatpush3.bf16.msra.mxu0 %v599_v1 }
  0x34   :  { %567 = vmatprep.subr.bf16.mxu0 %v607_v0 }
  0x37   :  { %568 = vmatpush3.bf16.msra.mxu0 %v600_v2 }
  0x38   :  { %569 = vmatprep.subr.bf16.mxu0 %v607_v0 }
  0x3b   :  { %570 = vmatpush3.bf16.msra.mxu0 %v601_v3 }
  0x3c   :  { %571 = vmatprep.subr.bf16.mxu0 %v607_v0 }
  0x3f   :  { %572 = vmatpush3.bf16.msra.mxu0 %v602_v4 }
  0xe2   :  { %v134_v20 = vpop.f32.mrf.mxu0 }
  0xe3   :  { %v150_v23 = vmul.f32 %v134_v20, %v134_v20 }
  0xe4   :  { %v535_v21 = vpop.f32.mrf.mxu0 }
  0xe6   :  { %v137_v22 = vpop.f32.mrf.mxu0 }
  0xe7   :  { %v141_v24 = vadd.f32 %v137_v22, %v134_v20  ;;  %v151_v25 = vmul.f32 %v137_v22, %v137_v22 }
  0xe8   :  { %v536_v26 = vpop.f32.mrf.mxu0 }
  0xe9   :  { %v142_v27 = vrot.slane %v141_v24, 4  ;;  %v152_v28 = vadd.f32 %v151_v25, %v150_v23 }
  0xeb   :  { %v143_v29 = vadd.f32 %v142_v27, %v141_v24  ;;  %v153_v30 = vrot.slane %v152_v28, 4 }
  0xed   :  { %v144_v31 = vrot.slane %v143_v29, 2  ;;  %v154_v32 = vadd.f32 %v153_v30, %v152_v28 }
  0xef   :  { %v145_v33 = vadd.f32 %v144_v31, %v143_v29  ;;  %v155_v34 = vrot.slane %v154_v32, 2 }
  0xf1   :  { %v146_v35 = vrot.slane %v145_v33, 1  ;;  %v156_v36 = vadd.f32 %v155_v34, %v154_v32 }
  0xf3   :  { %v147_v37 = vadd.f32 %v146_v35, %v145_v33  ;;  %v157_v38 = vrot.slane %v156_v36, 1  ;;  %v479_v33 = vld [vmem:[%s794_s5] ss:$0 sm:$0xff] }
  0xf5   :  { %v149_v39 = vmul.f32 0.0625, %v147_v37  ;;  %v158_v40 = vadd.f32 %v157_v38, %v156_v36  ;;  %v480_v36 = vld [vmem:[%s795_s6] ss:$0 sm:$0xff] }
  0xf7   :  { %v159_v41 = vmul.f32 0.0625, %v158_v40  ;;  %v160_v42 = vmul.f32 %v149_v39, %v149_v39  ;;  %v164_v46 = vsub.f32 %v137_v22, %v149_v39  ;;  %v163_v47 = vsub.f32 %v134_v20, %v149_v39 }
  0xf9   :  { %v161_v43 = vsub.f32 %v159_v41, %v160_v42 }
  0xfb   :  { %v162_v44 = vmax.f32 %v161_v43, 0.0 }
  0xfd   :  { %v165_v45 = vadd.f32 1e-05, %v162_v44  ;;  %v481_v44 = vld [vmem:[%s796_s8] ss:$0 sm:$0xff] }
  0xff   :  { %603 = vrsqrt.f32 %v165_v45 }
 0x10c   :  { %v604_v48 = vpop.eup %603 }
 0x10d   :  { %v168_v50 = vmul.f32 %v604_v48, %v164_v46  ;;  %v167_v51 = vmul.f32 %v604_v48, %v163_v47 }
 0x10f   :  { %v177_v53 = vmul.f32 %v469_v49, %v168_v50  ;;  %v176_v54 = vmul.f32 %v469_v49, %v167_v51 }
 0x111   :  { %v185_v55 = vadd.f32 %v470_v52, %v176_v54  ;;  %v186_v56 = vadd.f32 %v470_v52, %v177_v53 }
 0x113   :  { %v187_v57 = vmax.f32 %v185_v55, 0.0  ;;  %v188_v58 = vmax.f32 %v186_v56, 0.0 }
 0x115   :  { %v189_v59 = vpack.c.bf16 %v188_v58, %v187_v57 }
 0x117   :  { %554 = vmatmul.mubr.bf16.vlgmr.msra.gmra.mxu1 %v189_v59 }
 0x1d7   :  { %v288_v5 = vpop.f32.mrf.mxu1 }
 0x1d8   :  { %v303_v8 = vmul.f32 %v288_v5, %v288_v5 }
 0x1d9   :  { %v555_v6 = vpop.f32.mrf.mxu1 }
 0x1db   :  { %v291_v7 = vpop.f32.mrf.mxu1 }
 0x1dc   :  { %v295_v9 = vadd.f32 %v291_v7, %v288_v5  ;;  %v304_v10 = vmul.f32 %v291_v7, %v291_v7 }
 0x1dd   :  { %v556_v11 = vpop.f32.mrf.mxu1 }
 0x1de   :  { %v296_v12 = vrot.slane %v295_v9, 4  ;;  %v305_v13 = vadd.f32 %v304_v10, %v303_v8 }
 0x1e0   :  { %v297_v14 = vadd.f32 %v296_v12, %v295_v9  ;;  %v306_v15 = vrot.slane %v305_v13, 4 }
 0x1e2   :  { %v298_v16 = vrot.slane %v297_v14, 2  ;;  %v307_v17 = vadd.f32 %v306_v15, %v305_v13 }
 0x1e4   :  { %v299_v18 = vadd.f32 %v298_v16, %v297_v14  ;;  %v308_v0 = vrot.slane %v307_v17, 2 }
 0x1e6   :  { %v300_v19 = vrot.slane %v299_v18, 1  ;;  %v309_v20 = vadd.f32 %v308_v0, %v307_v17 }
 0x1e8   :  { %v301_v21 = vadd.f32 %v300_v19, %v299_v18  ;;  %v310_v22 = vrot.slane %v309_v20, 1 }
 0x1ea   :  { %v302_v23 = vmul.f32 0.0625, %v301_v21  ;;  %v311_v24 = vadd.f32 %v310_v22, %v309_v20 }
 0x1ec   :  { %v312_v25 = vmul.f32 0.0625, %v311_v24  ;;  %v313_v26 = vmul.f32 %v302_v23, %v302_v23  ;;  %v316_v30 = vsub.f32 %v288_v5, %v302_v23  ;;  %v317_v31 = vsub.f32 %v291_v7, %v302_v23 }
 0x1ee   :  { %v314_v27 = vsub.f32 %v312_v25, %v313_v26 }
 0x1f0   :  { %v315_v28 = vmax.f32 %v314_v27, 0.0 }
 0x1f2   :  { %v318_v29 = vadd.f32 1e-05, %v315_v28 }
 0x1f4   :  { %605 = vrsqrt.f32 %v318_v29 }
 0x201   :  { %v606_v32 = vpop.eup %605 }
 0x202   :  { %v320_v34 = vmul.f32 %v606_v32, %v316_v30  ;;  %v321_v35 = vmul.f32 %v606_v32, %v317_v31 }
 0x204   :  { %v329_v37 = vmul.f32 %v479_v33, %v320_v34  ;;  %v330_v38 = vmul.f32 %v479_v33, %v321_v35 }
 0x206   :  { %v339_v39 = vadd.f32 %v480_v36, %v330_v38  ;;  %v338_v40 = vadd.f32 %v480_v36, %v329_v37 }
 0x208   :  { %v340_v41 = vmax.f32 %v338_v40, 0.0  ;;  %v341_v42 = vmax.f32 %v339_v39, 0.0 }
 0x20a   :  { %v342_v43 = vpack.c.bf16 %v341_v42, %v340_v41 }
 0x20c   :  { %574 = vmatmul.mubr.bf16.vlgmr.msra.gmra.mxu0 %v342_v43 }
 0x2cc   :  { %v448_v45 = vpop.f32.mrf.mxu0 }
 0x2cd   :  { %v449_v46 = vadd.f32 %v481_v44, %v448_v45 }
 0x2ce   :  { %v575_v47 = vpop.f32.mrf.mxu0 }
 0x2cf   :  { %455 = vst [vmem:[%s797_s9] sm:$0xff] %v449_v46 }
 0x2d0   :  { %v451_v48 = vpop.f32.mrf.mxu0 }
 0x2d1   :  { %v452_v49 = vadd.f32 %v481_v44, %v451_v48 }
 0x2d2   :  { %v576_v50 = vpop.f32.mrf.mxu0 }
 0x2d3   :  { %456 = vst [vmem:[%s797_s9 + $0x8] sm:$0xff] %v452_v49 }

</bundles_post_ra>
